<compile_context>
chip_gen: v7x
topology: tpu7x:2x2x1
jax: 0.10.0
libtpu: 0.0.40
codegen_flags: <defaults>
</compile_context>

<pallas_src>
import functools

import jax
import jax.numpy as jnp
from jax import lax
from jax.experimental import pallas as pl
from jax.experimental.pallas import tpu as pltpu  # noqa: F401  (kept for tuning hooks)


def _self_attn_kernel(B, N, n_head, d_k, inv_temp,
                      seq_ref, seqt_ref, bias_ref, par_ref, out_ref, attn_ref):
    """Grid-free fused SelfAttn forward.

    par_ref row layout (lane dim == D; every access is a sublane ROW slice):
      [0       : D    ]  w_qs          rows h*d_k:(h+1)*d_k == head h
      [D       : 2D   ]  w_ks
      [2D      : 3D   ]  w_vs
      [3D      : 4D   ]  fc.weight^T   rows h*d_v:(h+1)*d_v == head h
      [4D      ]         fc.bias
      [4D + 1  ]         layer_norm.weight
      [4D + 2  ]         layer_norm.bias
    """
    D = n_head * d_k

    # x = concat(seq, seq_t) along features: shared q=k=v input AND the residual.
    xf = jnp.concatenate([seq_ref[...], seqt_ref[...]], axis=-1)        # [B*N, D]

    fc_b  = par_ref[4 * D    : 4 * D + 1, :]                            # [1, D]
    gamma = par_ref[4 * D + 1: 4 * D + 2, :]
    beta  = par_ref[4 * D + 2: 4 * D + 3, :]
    bias  = bias_ref[...]                                               # [B, N]

    nt = (((1,), (1,)), ((), ()))   # contract lane dims: x[n,d] . w[j,d] -> [n,j]

    # ---- per-head projections: 6 tiny MXU matmuls, no lane slicing, no stacks ----
    q, k, v = [], [], []
    for h in range(n_head):
        wq_h = par_ref[0 * D + h * d_k: 0 * D + (h + 1) * d_k, :]       # [d_k, D]
        wk_h = par_ref[1 * D + h * d_k: 1 * D + (h + 1) * d_k, :]
        wv_h = par_ref[2 * D + h * d_k: 2 * D + (h + 1) * d_k, :]
        q.append(lax.dot_general(xf, wq_h, nt,
                                 preferred_element_type=jnp.float32) * inv_temp)
        k.append(lax.dot_general(xf, wk_h, nt, preferred_element_type=jnp.float32))
        v.append(lax.dot_general(xf, wv_h, nt, preferred_element_type=jnp.float32))

    # ---- per (batch, head): scores, softmax, attn@V, per-head fc accumulation ----
    for b in range(B):
        rows = slice(b * N, (b + 1) * N)     # N == 8 rows: one f32 sublane tile (free)
        bias_b = bias[b:b + 1, :]            # [1, N], broadcast over query rows
        y_b = xf[rows, :] + fc_b             # residual + fc bias                [N, D]

        for h in range(n_head):
            qb, kb, vb = q[h][rows, :], k[h][rows, :], v[h][rows, :]    # [N, d_k]

            s = lax.dot_general(qb, kb, nt,
                                preferred_element_type=jnp.float32)    # [N, N]
            s = s + bias_b                   # additive -1e10 mask bias

            # softmax over keys; reciprocal on the EUP + one Newton step (f32 accurate)
            s_max = jnp.max(s, axis=-1, keepdims=True)
            e = jnp.exp(s - s_max)
            l = jnp.sum(e, axis=-1, keepdims=True)
            r = pl.reciprocal(l, approx=True)
            r = r * (2.0 - l * r)
            p = e * r

            attn_ref[h * B + b] = p          # torch head-major [H*B, N, N] layout

            o = jnp.dot(p, vb, preferred_element_type=jnp.float32)     # [N, d_k]
            wo_h = par_ref[3 * D + h * d_k: 3 * D + (h + 1) * d_k, :]  # [d_v, D]
            y_b = y_b + jnp.dot(o, wo_h, preferred_element_type=jnp.float32)

        # ---- LayerNorm(d_model, eps=1e-5) + affine, one row-block store ----
        mu = jnp.mean(y_b, axis=-1, keepdims=True)
        var = jnp.mean((y_b - mu) * (y_b - mu), axis=-1, keepdims=True)
        yn = (y_b - mu) * lax.rsqrt(var + 1e-5)
        out_ref[rows, :] = yn * gamma + beta


def prepare_params(params):
    """Pack all module weights into ONE [4*D+3, D] f32 slab.  Call once, outside jit."""
    D = params["ln_w"].shape[0]
    slab = jnp.concatenate(
        [
            params["wq"],              # [H*d_k, D]
            params["wk"],
            params["wv"],
            params["fc_w"].T,          # [H*d_v, D]
            params["fc_b"][None, :],
            params["ln_w"][None, :],
            params["ln_b"][None, :],
        ],
        axis=0,
    ).astype(jnp.float32)
    assert slab.shape == (4 * D + 3, D)
    return slab


@functools.partial(jax.jit, static_argnums=(4,))
def self_attn_forward(seq, seq_t, mask, param_slab, n_head):
    """seq [B,N,feat], seq_t [B,N,time], mask [B,N] bool (True == null position)."""
    B, N, feat_dim = seq.shape
    time_dim = seq_t.shape[-1]
    D = feat_dim + time_dim
    assert D % n_head == 0
    d_k = D // n_head
    inv_temp = 1.0 / (float(d_k) ** 0.5)

    # metadata-only reshapes; the feature concat itself is fused into the kernel
    seq2d = seq.reshape(B * N, feat_dim).astype(jnp.float32)
    seqt2d = seq_t.reshape(B * N, time_dim).astype(jnp.float32)
    # additive mask bias, one small [B, N] operand (broadcast inside the kernel)
    bias = jnp.where(mask, jnp.float32(-1e10), jnp.float32(0.0))

    kernel = functools.partial(_self_attn_kernel, B, N, n_head, d_k, inv_temp)

    out2d, attn = pl.pallas_call(
        kernel,
        out_shape=(
            jax.ShapeDtypeStruct((B * N, D), jnp.float32),
            jax.ShapeDtypeStruct((n_head * B, N, N), jnp.float32),  # torch attn layout
        ),
    )(seq2d, seqt2d, bias, param_slab)

    return out2d.reshape(B, N, D), attn


def _reference(seq, seq_t, mask, params, n_head):
    """Pure-JAX reference mirroring the PyTorch forward (eval mode)."""
    B, N, _ = seq.shape
    x = jnp.concatenate([seq, seq_t], axis=-1).astype(jnp.float32)
    D = x.shape[-1]
    d_k = D // n_head
    m = mask.astype(bool)[:, None, :]                     # [B, 1, N]

    def proj(w):  # [B,N,D] @ [H*dk, D]^T -> [B, N, H, dk] -> [H*B, N, dk]
        y = jnp.einsum("bnd,od->bno", x, w).reshape(B, N, n_head, d_k)
        return jnp.transpose(y, (2, 0, 1, 3)).reshape(n_head * B, N, d_k)

    q, k, v = proj(params["wq"]), proj(params["wk"]), proj(params["wv"])
    mm = jnp.tile(m, (n_head, 1, 1))                      # [H*B, 1, N]
    attn = jnp.einsum("bqd,bkd->bqk", q, k) / (d_k ** 0.5)
    attn = jnp.where(mm, -1e10, attn)
    attn = jax.nn.softmax(attn, axis=-1)
    out = jnp.einsum("bqk,bkd->bqd", attn, v)             # [H*B, N, dk]
    out = out.reshape(n_head, B, N, d_k)
    out = jnp.transpose(out, (1, 2, 0, 3)).reshape(B, N, n_head * d_k)
    out = jnp.einsum("bnf,df->bnd", out, params["fc_w"]) + params["fc_b"]
    out = out + x
    mu = jnp.mean(out, axis=-1, keepdims=True)
    var = jnp.mean((out - mu) ** 2, axis=-1, keepdims=True)
    out = (out - mu) / jnp.sqrt(var + 1e-5)
    out = out * params["ln_w"] + params["ln_b"]
    return out, attn


if __name__ == "__main__":
    # small shapes consistent with SelfAttn: B=2, N=8, feat_dim=20, time_dim=12
    B, N = 2, 8
    feat_dim, time_dim = 20, 12
    n_head = 2
    D = feat_dim + time_dim          # model_dim = 32
    d_k = D // n_head                # 16

    key = jax.random.PRNGKey(0)
    k_seq, k_t, k_q, k_k, k_v, k_fc, k_fb = jax.random.split(key, 7)

    seq = jax.random.normal(k_seq, (B, N, feat_dim), dtype=jnp.float32)
    seq_t = jax.random.normal(k_t, (B, N, time_dim), dtype=jnp.float32)
    # mask[b, n] == True -> null position (masked out); keep first positions valid
    mask = jnp.arange(N)[None, :] >= jnp.array([6, 5])[:, None]      # [B, N] bool

    # deterministic parameter init mirroring the module's __init__
    std_qk = (2.0 / (D + d_k)) ** 0.5
    std_xav = (2.0 / (n_head * d_k + D)) ** 0.5
    params = {
        "wq": jax.random.normal(k_q, (n_head * d_k, D), dtype=jnp.float32) * std_qk,
        "wk": jax.random.normal(k_k, (n_head * d_k, D), dtype=jnp.float32) * std_qk,
        "wv": jax.random.normal(k_v, (n_head * d_k, D), dtype=jnp.float32) * std_qk,
        "fc_w": jax.random.normal(k_fc, (D, n_head * d_k), dtype=jnp.float32) * std_xav,
        "fc_b": jax.random.uniform(k_fb, (D,), dtype=jnp.float32,
                                   minval=-0.1, maxval=0.1),
        "ln_w": jnp.ones((D,), dtype=jnp.float32),
        "ln_b": jnp.zeros((D,), dtype=jnp.float32),
    }

    # one-time weight packing, hoisted out of the per-call jit path
    param_slab = jax.block_until_ready(prepare_params(params))

    out, attn = self_attn_forward(seq, seq_t, mask, param_slab, n_head)
    out = jax.block_until_ready(out)
    attn = jax.block_until_ready(attn)

    out_ref, attn_ref = _reference(seq, seq_t, mask, params, n_head)
    assert out.shape == (B, N, D) and attn.shape == (n_head * B, N, N)
    assert jnp.allclose(out, out_ref, atol=1e-4, rtol=1e-4)
    assert jnp.allclose(attn, attn_ref, atol=1e-4, rtol=1e-4)

    print("KERNEL_OK")
</pallas_src>

<mosaic_0001>
module attributes {stable_mosaic.version = 11 : i64} {
  func.func @_self_attn_kernel(%arg0: memref<16x20xf32, #tpu.memory_space<vmem>>, %arg1: memref<16x12xf32, #tpu.memory_space<vmem>>, %arg2: memref<2x8xf32, #tpu.memory_space<vmem>>, %arg3: memref<131x32xf32, #tpu.memory_space<vmem>>, %arg4: memref<16x32xf32, #tpu.memory_space<vmem>>, %arg5: memref<4x8x8xf32, #tpu.memory_space<vmem>>) attributes {dimension_semantics = [], scalar_prefetch = 0 : i64, scratch_operands = 0 : i64, tpu.core_type = #tpu.core_type<tc>} {
    %c0 = arith.constant 0 : index
    %c0_0 = arith.constant 0 : index
    %0 = vector.load %arg0[%c0, %c0_0] : memref<16x20xf32, #tpu.memory_space<vmem>>, vector<16x20xf32>
    %c0_1 = arith.constant 0 : index
    %c0_2 = arith.constant 0 : index
    %1 = vector.load %arg1[%c0_1, %c0_2] : memref<16x12xf32, #tpu.memory_space<vmem>>, vector<16x12xf32>
    %2 = tpu.concatenate %0, %1 in 1 : vector<16x20xf32>, vector<16x12xf32> -> vector<16x32xf32>
    %c128 = arith.constant 128 : index
    %c0_3 = arith.constant 0 : index
    %3 = vector.load %arg3[%c128, %c0_3] : memref<131x32xf32, #tpu.memory_space<vmem>>, vector<1x32xf32>
    %c129 = arith.constant 129 : index
    %c0_4 = arith.constant 0 : index
    %4 = vector.load %arg3[%c129, %c0_4] : memref<131x32xf32, #tpu.memory_space<vmem>>, vector<1x32xf32>
    %c130 = arith.constant 130 : index
    %c0_5 = arith.constant 0 : index
    %5 = vector.load %arg3[%c130, %c0_5] : memref<131x32xf32, #tpu.memory_space<vmem>>, vector<1x32xf32>
    %c0_6 = arith.constant 0 : index
    %c0_7 = arith.constant 0 : index
    %6 = vector.load %arg2[%c0_6, %c0_7] : memref<2x8xf32, #tpu.memory_space<vmem>>, vector<2x8xf32>
    %c0_8 = arith.constant 0 : index
    %c0_9 = arith.constant 0 : index
    %7 = vector.load %arg3[%c0_8, %c0_9] : memref<131x32xf32, #tpu.memory_space<vmem>>, vector<16x32xf32>
    %c32 = arith.constant 32 : index
    %c0_10 = arith.constant 0 : index
    %8 = vector.load %arg3[%c32, %c0_10] : memref<131x32xf32, #tpu.memory_space<vmem>>, vector<16x32xf32>
    %c64 = arith.constant 64 : index
    %c0_11 = arith.constant 0 : index
    %9 = vector.load %arg3[%c64, %c0_11] : memref<131x32xf32, #tpu.memory_space<vmem>>, vector<16x32xf32>
    %cst = arith.constant dense<0.000000e+00> : vector<16x16xf32>
    %10 = tpu.matmul %2, %7, %cst {dimension_numbers = #tpu.dot_dimension_numbers<[1], [1], [0], [0], [0, 0, 1, 0], [], []>} : vector<16x32xf32>, vector<16x32xf32>, vector<16x16xf32> -> vector<16x16xf32>
    %cst_12 = arith.constant 2.500000e-01 : f32
    %11 = vector.broadcast %cst_12 : f32 to vector<16x16xf32>
    %12 = arith.mulf %10, %11 : vector<16x16xf32>
    %cst_13 = arith.constant dense<0.000000e+00> : vector<16x16xf32>
    %13 = tpu.matmul %2, %8, %cst_13 {dimension_numbers = #tpu.dot_dimension_numbers<[1], [1], [0], [0], [0, 0, 1, 0], [], []>} : vector<16x32xf32>, vector<16x32xf32>, vector<16x16xf32> -> vector<16x16xf32>
    %cst_14 = arith.constant dense<0.000000e+00> : vector<16x16xf32>
    %14 = tpu.matmul %2, %9, %cst_14 {dimension_numbers = #tpu.dot_dimension_numbers<[1], [1], [0], [0], [0, 0, 1, 0], [], []>} : vector<16x32xf32>, vector<16x32xf32>, vector<16x16xf32> -> vector<16x16xf32>
    %c16 = arith.constant 16 : index
    %c0_15 = arith.constant 0 : index
    %15 = vector.load %arg3[%c16, %c0_15] : memref<131x32xf32, #tpu.memory_space<vmem>>, vector<16x32xf32>
    %c48 = arith.constant 48 : index
    %c0_16 = arith.constant 0 : index
    %16 = vector.load %arg3[%c48, %c0_16] : memref<131x32xf32, #tpu.memory_space<vmem>>, vector<16x32xf32>
    %c80 = arith.constant 80 : index
    %c0_17 = arith.constant 0 : index
    %17 = vector.load %arg3[%c80, %c0_17] : memref<131x32xf32, #tpu.memory_space<vmem>>, vector<16x32xf32>
    %cst_18 = arith.constant dense<0.000000e+00> : vector<16x16xf32>
    %18 = tpu.matmul %2, %15, %cst_18 {dimension_numbers = #tpu.dot_dimension_numbers<[1], [1], [0], [0], [0, 0, 1, 0], [], []>} : vector<16x32xf32>, vector<16x32xf32>, vector<16x16xf32> -> vector<16x16xf32>
    %cst_19 = arith.constant 2.500000e-01 : f32
    %19 = vector.broadcast %cst_19 : f32 to vector<16x16xf32>
    %20 = arith.mulf %18, %19 : vector<16x16xf32>
    %cst_20 = arith.constant dense<0.000000e+00> : vector<16x16xf32>
    %21 = tpu.matmul %2, %16, %cst_20 {dimension_numbers = #tpu.dot_dimension_numbers<[1], [1], [0], [0], [0, 0, 1, 0], [], []>} : vector<16x32xf32>, vector<16x32xf32>, vector<16x16xf32> -> vector<16x16xf32>
    %cst_21 = arith.constant dense<0.000000e+00> : vector<16x16xf32>
    %22 = tpu.matmul %2, %17, %cst_21 {dimension_numbers = #tpu.dot_dimension_numbers<[1], [1], [0], [0], [0, 0, 1, 0], [], []>} : vector<16x32xf32>, vector<16x32xf32>, vector<16x16xf32> -> vector<16x16xf32>
    %23 = vector.extract_strided_slice %6 {offsets = [0, 0], sizes = [1, 8], strides = [1, 1]} : vector<2x8xf32> to vector<1x8xf32>
    %24 = vector.extract_strided_slice %2 {offsets = [0, 0], sizes = [8, 32], strides = [1, 1]} : vector<16x32xf32> to vector<8x32xf32>
    %25 = vector.broadcast %3 : vector<1x32xf32> to vector<8x32xf32>
    %26 = arith.addf %24, %25 : vector<8x32xf32>
    %27 = vector.extract_strided_slice %12 {offsets = [0, 0], sizes = [8, 16], strides = [1, 1]} : vector<16x16xf32> to vector<8x16xf32>
    %28 = vector.extract_strided_slice %13 {offsets = [0, 0], sizes = [8, 16], strides = [1, 1]} : vector<16x16xf32> to vector<8x16xf32>
    %29 = vector.extract_strided_slice %14 {offsets = [0, 0], sizes = [8, 16], strides = [1, 1]} : vector<16x16xf32> to vector<8x16xf32>
    %cst_22 = arith.constant dense<0.000000e+00> : vector<8x8xf32>
    %30 = tpu.matmul %27, %28, %cst_22 {dimension_numbers = #tpu.dot_dimension_numbers<[1], [1], [0], [0], [0, 0, 1, 0], [], []>} : vector<8x16xf32>, vector<8x16xf32>, vector<8x8xf32> -> vector<8x8xf32>
    %31 = vector.broadcast %23 : vector<1x8xf32> to vector<8x8xf32>
    %32 = arith.addf %30, %31 : vector<8x8xf32>
    %cst_23 = arith.constant dense<0xFF800000> : vector<8xf32>
    %33 = vector.multi_reduction <maximumf>, %32, %cst_23 [1] : vector<8x8xf32> to vector<8xf32>
    %34 = vector.shape_cast %33 : vector<8xf32> to vector<8x1xf32>
    %35 = vector.broadcast %34 : vector<8x1xf32> to vector<8x8xf32>
    %36 = arith.subf %32, %35 : vector<8x8xf32>
    %37 = math.exp %36 : vector<8x8xf32>
    %cst_24 = arith.constant dense<0.000000e+00> : vector<8xf32>
    %38 = vector.multi_reduction <add>, %37, %cst_24 [1] : vector<8x8xf32> to vector<8xf32>
    %39 = vector.shape_cast %38 : vector<8xf32> to vector<8x1xf32>
    %40 = tpu.reciprocal %39 {approx = true} : vector<8x1xf32> -> vector<8x1xf32>
    %41 = arith.mulf %39, %40 : vector<8x1xf32>
    %cst_25 = arith.constant 2.000000e+00 : f32
    %42 = vector.broadcast %cst_25 : f32 to vector<8x1xf32>
    %43 = arith.subf %42, %41 : vector<8x1xf32>
    %44 = arith.mulf %40, %43 : vector<8x1xf32>
    %45 = vector.broadcast %44 : vector<8x1xf32> to vector<8x8xf32>
    %46 = arith.mulf %37, %45 : vector<8x8xf32>
    %c0_26 = arith.constant 0 : index
    %c0_27 = arith.constant 0 : index
    %c0_28 = arith.constant 0 : index
    %47 = vector.load %arg5[%c0_26, %c0_27, %c0_28] : memref<4x8x8xf32, #tpu.memory_space<vmem>>, vector<1x8x8xf32>
    %48 = vector.shape_cast %47 : vector<1x8x8xf32> to vector<8x8xf32>
    %49 = vector.shape_cast %46 : vector<8x8xf32> to vector<1x8x8xf32>
    tpu.vector_store %arg5[%c0_26, %c0_27, %c0_28], %49 {strides = array<i32>} : memref<4x8x8xf32, #tpu.memory_space<vmem>>, vector<1x8x8xf32>,
    %cst_29 = arith.constant dense<0.000000e+00> : vector<8x16xf32>
    %50 = tpu.matmul %46, %29, %cst_29 {dimension_numbers = #tpu.dot_dimension_numbers<[1], [0], [0], [1], [0, 0, 1, 1], [], []>} : vector<8x8xf32>, vector<8x16xf32>, vector<8x16xf32> -> vector<8x16xf32>
    %c96 = arith.constant 96 : index
    %c0_30 = arith.constant 0 : index
    %51 = vector.load %arg3[%c96, %c0_30] : memref<131x32xf32, #tpu.memory_space<vmem>>, vector<16x32xf32>
    %cst_31 = arith.constant dense<0.000000e+00> : vector<8x32xf32>
    %52 = tpu.matmul %50, %51, %cst_31 {dimension_numbers = #tpu.dot_dimension_numbers<[1], [0], [0], [1], [0, 0, 1, 1], [], []>} : vector<8x16xf32>, vector<16x32xf32>, vector<8x32xf32> -> vector<8x32xf32>
    %53 = arith.addf %26, %52 : vector<8x32xf32>
    %54 = vector.extract_strided_slice %20 {offsets = [0, 0], sizes = [8, 16], strides = [1, 1]} : vector<16x16xf32> to vector<8x16xf32>
    %55 = vector.extract_strided_slice %21 {offsets = [0, 0], sizes = [8, 16], strides = [1, 1]} : vector<16x16xf32> to vector<8x16xf32>
    %56 = vector.extract_strided_slice %22 {offsets = [0, 0], sizes = [8, 16], strides = [1, 1]} : vector<16x16xf32> to vector<8x16xf32>
    %cst_32 = arith.constant dense<0.000000e+00> : vector<8x8xf32>
    %57 = tpu.matmul %54, %55, %cst_32 {dimension_numbers = #tpu.dot_dimension_numbers<[1], [1], [0], [0], [0, 0, 1, 0], [], []>} : vector<8x16xf32>, vector<8x16xf32>, vector<8x8xf32> -> vector<8x8xf32>
    %58 = vector.broadcast %23 : vector<1x8xf32> to vector<8x8xf32>
    %59 = arith.addf %57, %58 : vector<8x8xf32>
    %cst_33 = arith.constant dense<0xFF800000> : vector<8xf32>
    %60 = vector.multi_reduction <maximumf>, %59, %cst_33 [1] : vector<8x8xf32> to vector<8xf32>
    %61 = vector.shape_cast %60 : vector<8xf32> to vector<8x1xf32>
    %62 = vector.broadcast %61 : vector<8x1xf32> to vector<8x8xf32>
    %63 = arith.subf %59, %62 : vector<8x8xf32>
    %64 = math.exp %63 : vector<8x8xf32>
    %cst_34 = arith.constant dense<0.000000e+00> : vector<8xf32>
    %65 = vector.multi_reduction <add>, %64, %cst_34 [1] : vector<8x8xf32> to vector<8xf32>
    %66 = vector.shape_cast %65 : vector<8xf32> to vector<8x1xf32>
    %67 = tpu.reciprocal %66 {approx = true} : vector<8x1xf32> -> vector<8x1xf32>
    %68 = arith.mulf %66, %67 : vector<8x1xf32>
    %cst_35 = arith.constant 2.000000e+00 : f32
    %69 = vector.broadcast %cst_35 : f32 to vector<8x1xf32>
    %70 = arith.subf %69, %68 : vector<8x1xf32>
    %71 = arith.mulf %67, %70 : vector<8x1xf32>
    %72 = vector.broadcast %71 : vector<8x1xf32> to vector<8x8xf32>
    %73 = arith.mulf %64, %72 : vector<8x8xf32>
    %c2 = arith.constant 2 : index
    %c0_36 = arith.constant 0 : index
    %c0_37 = arith.constant 0 : index
    %74 = vector.load %arg5[%c2, %c0_36, %c0_37] : memref<4x8x8xf32, #tpu.memory_space<vmem>>, vector<1x8x8xf32>
    %75 = vector.shape_cast %74 : vector<1x8x8xf32> to vector<8x8xf32>
    %76 = vector.shape_cast %73 : vector<8x8xf32> to vector<1x8x8xf32>
    tpu.vector_store %arg5[%c2, %c0_36, %c0_37], %76 {strides = array<i32>} : memref<4x8x8xf32, #tpu.memory_space<vmem>>, vector<1x8x8xf32>,
    %cst_38 = arith.constant dense<0.000000e+00> : vector<8x16xf32>
    %77 = tpu.matmul %73, %56, %cst_38 {dimension_numbers = #tpu.dot_dimension_numbers<[1], [0], [0], [1], [0, 0, 1, 1], [], []>} : vector<8x8xf32>, vector<8x16xf32>, vector<8x16xf32> -> vector<8x16xf32>
    %c112 = arith.constant 112 : index
    %c0_39 = arith.constant 0 : index
    %78 = vector.load %arg3[%c112, %c0_39] : memref<131x32xf32, #tpu.memory_space<vmem>>, vector<16x32xf32>
    %cst_40 = arith.constant dense<0.000000e+00> : vector<8x32xf32>
    %79 = tpu.matmul %77, %78, %cst_40 {dimension_numbers = #tpu.dot_dimension_numbers<[1], [0], [0], [1], [0, 0, 1, 1], [], []>} : vector<8x16xf32>, vector<16x32xf32>, vector<8x32xf32> -> vector<8x32xf32>
    %80 = arith.addf %53, %79 : vector<8x32xf32>
    %cst_41 = arith.constant dense<0.000000e+00> : vector<8xf32>
    %81 = vector.multi_reduction <add>, %80, %cst_41 [1] : vector<8x32xf32> to vector<8xf32>
    %82 = vector.shape_cast %81 : vector<8xf32> to vector<8x1xf32>
    %cst_42 = arith.constant 3.200000e+01 : f32
    %83 = vector.broadcast %cst_42 : f32 to vector<8x1xf32>
    %84 = arith.divf %82, %83 : vector<8x1xf32>
    %85 = vector.broadcast %84 : vector<8x1xf32> to vector<8x32xf32>
    %86 = arith.subf %80, %85 : vector<8x32xf32>
    %87 = vector.broadcast %84 : vector<8x1xf32> to vector<8x32xf32>
    %88 = arith.subf %80, %87 : vector<8x32xf32>
    %89 = arith.mulf %86, %88 : vector<8x32xf32>
    %cst_43 = arith.constant dense<0.000000e+00> : vector<8xf32>
    %90 = vector.multi_reduction <add>, %89, %cst_43 [1] : vector<8x32xf32> to vector<8xf32>
    %91 = vector.shape_cast %90 : vector<8xf32> to vector<8x1xf32>
    %cst_44 = arith.constant 3.200000e+01 : f32
    %92 = vector.broadcast %cst_44 : f32 to vector<8x1xf32>
    %93 = arith.divf %91, %92 : vector<8x1xf32>
    %94 = vector.broadcast %84 : vector<8x1xf32> to vector<8x32xf32>
    %95 = arith.subf %80, %94 : vector<8x32xf32>
    %cst_45 = arith.constant 9.99999974E-6 : f32
    %96 = vector.broadcast %cst_45 : f32 to vector<8x1xf32>
    %97 = arith.addf %93, %96 : vector<8x1xf32>
    %98 = math.rsqrt %97 : vector<8x1xf32>
    %99 = vector.broadcast %98 : vector<8x1xf32> to vector<8x32xf32>
    %100 = arith.mulf %95, %99 : vector<8x32xf32>
    %101 = vector.broadcast %4 : vector<1x32xf32> to vector<8x32xf32>
    %102 = arith.mulf %100, %101 : vector<8x32xf32>
    %103 = vector.broadcast %5 : vector<1x32xf32> to vector<8x32xf32>
    %104 = arith.addf %102, %103 : vector<8x32xf32>
    %c0_46 = arith.constant 0 : index
    %c0_47 = arith.constant 0 : index
    %105 = vector.load %arg4[%c0_46, %c0_47] : memref<16x32xf32, #tpu.memory_space<vmem>>, vector<8x32xf32>
    tpu.vector_store %arg4[%c0_46, %c0_47], %104 {strides = array<i32>} : memref<16x32xf32, #tpu.memory_space<vmem>>, vector<8x32xf32>,
    %106 = vector.extract_strided_slice %6 {offsets = [1, 0], sizes = [1, 8], strides = [1, 1]} : vector<2x8xf32> to vector<1x8xf32>
    %107 = vector.extract_strided_slice %2 {offsets = [8, 0], sizes = [8, 32], strides = [1, 1]} : vector<16x32xf32> to vector<8x32xf32>
    %108 = vector.broadcast %3 : vector<1x32xf32> to vector<8x32xf32>
    %109 = arith.addf %107, %108 : vector<8x32xf32>
    %110 = vector.extract_strided_slice %12 {offsets = [8, 0], sizes = [8, 16], strides = [1, 1]} : vector<16x16xf32> to vector<8x16xf32>
    %111 = vector.extract_strided_slice %13 {offsets = [8, 0], sizes = [8, 16], strides = [1, 1]} : vector<16x16xf32> to vector<8x16xf32>
    %112 = vector.extract_strided_slice %14 {offsets = [8, 0], sizes = [8, 16], strides = [1, 1]} : vector<16x16xf32> to vector<8x16xf32>
    %cst_48 = arith.constant dense<0.000000e+00> : vector<8x8xf32>
    %113 = tpu.matmul %110, %111, %cst_48 {dimension_numbers = #tpu.dot_dimension_numbers<[1], [1], [0], [0], [0, 0, 1, 0], [], []>} : vector<8x16xf32>, vector<8x16xf32>, vector<8x8xf32> -> vector<8x8xf32>
    %114 = vector.broadcast %106 : vector<1x8xf32> to vector<8x8xf32>
    %115 = arith.addf %113, %114 : vector<8x8xf32>
    %cst_49 = arith.constant dense<0xFF800000> : vector<8xf32>
    %116 = vector.multi_reduction <maximumf>, %115, %cst_49 [1] : vector<8x8xf32> to vector<8xf32>
    %117 = vector.shape_cast %116 : vector<8xf32> to vector<8x1xf32>
    %118 = vector.broadcast %117 : vector<8x1xf32> to vector<8x8xf32>
    %119 = arith.subf %115, %118 : vector<8x8xf32>
    %120 = math.exp %119 : vector<8x8xf32>
    %cst_50 = arith.constant dense<0.000000e+00> : vector<8xf32>
    %121 = vector.multi_reduction <add>, %120, %cst_50 [1] : vector<8x8xf32> to vector<8xf32>
    %122 = vector.shape_cast %121 : vector<8xf32> to vector<8x1xf32>
    %123 = tpu.reciprocal %122 {approx = true} : vector<8x1xf32> -> vector<8x1xf32>
    %124 = arith.mulf %122, %123 : vector<8x1xf32>
    %cst_51 = arith.constant 2.000000e+00 : f32
    %125 = vector.broadcast %cst_51 : f32 to vector<8x1xf32>
    %126 = arith.subf %125, %124 : vector<8x1xf32>
    %127 = arith.mulf %123, %126 : vector<8x1xf32>
    %128 = vector.broadcast %127 : vector<8x1xf32> to vector<8x8xf32>
    %129 = arith.mulf %120, %128 : vector<8x8xf32>
    %c1 = arith.constant 1 : index
    %c0_52 = arith.constant 0 : index
    %c0_53 = arith.constant 0 : index
    %130 = vector.load %arg5[%c1, %c0_52, %c0_53] : memref<4x8x8xf32, #tpu.memory_space<vmem>>, vector<1x8x8xf32>
    %131 = vector.shape_cast %130 : vector<1x8x8xf32> to vector<8x8xf32>
    %132 = vector.shape_cast %129 : vector<8x8xf32> to vector<1x8x8xf32>
    tpu.vector_store %arg5[%c1, %c0_52, %c0_53], %132 {strides = array<i32>} : memref<4x8x8xf32, #tpu.memory_space<vmem>>, vector<1x8x8xf32>,
    %cst_54 = arith.constant dense<0.000000e+00> : vector<8x16xf32>
    %133 = tpu.matmul %129, %112, %cst_54 {dimension_numbers = #tpu.dot_dimension_numbers<[1], [0], [0], [1], [0, 0, 1, 1], [], []>} : vector<8x8xf32>, vector<8x16xf32>, vector<8x16xf32> -> vector<8x16xf32>
    %c96_55 = arith.constant 96 : index
    %c0_56 = arith.constant 0 : index
    %134 = vector.load %arg3[%c96_55, %c0_56] : memref<131x32xf32, #tpu.memory_space<vmem>>, vector<16x32xf32>
    %cst_57 = arith.constant dense<0.000000e+00> : vector<8x32xf32>
    %135 = tpu.matmul %133, %134, %cst_57 {dimension_numbers = #tpu.dot_dimension_numbers<[1], [0], [0], [1], [0, 0, 1, 1], [], []>} : vector<8x16xf32>, vector<16x32xf32>, vector<8x32xf32> -> vector<8x32xf32>
    %136 = arith.addf %109, %135 : vector<8x32xf32>
    %137 = vector.extract_strided_slice %20 {offsets = [8, 0], sizes = [8, 16], strides = [1, 1]} : vector<16x16xf32> to vector<8x16xf32>
    %138 = vector.extract_strided_slice %21 {offsets = [8, 0], sizes = [8, 16], strides = [1, 1]} : vector<16x16xf32> to vector<8x16xf32>
    %139 = vector.extract_strided_slice %22 {offsets = [8, 0], sizes = [8, 16], strides = [1, 1]} : vector<16x16xf32> to vector<8x16xf32>
    %cst_58 = arith.constant dense<0.000000e+00> : vector<8x8xf32>
    %140 = tpu.matmul %137, %138, %cst_58 {dimension_numbers = #tpu.dot_dimension_numbers<[1], [1], [0], [0], [0, 0, 1, 0], [], []>} : vector<8x16xf32>, vector<8x16xf32>, vector<8x8xf32> -> vector<8x8xf32>
    %141 = vector.broadcast %106 : vector<1x8xf32> to vector<8x8xf32>
    %142 = arith.addf %140, %141 : vector<8x8xf32>
    %cst_59 = arith.constant dense<0xFF800000> : vector<8xf32>
    %143 = vector.multi_reduction <maximumf>, %142, %cst_59 [1] : vector<8x8xf32> to vector<8xf32>
    %144 = vector.shape_cast %143 : vector<8xf32> to vector<8x1xf32>
    %145 = vector.broadcast %144 : vector<8x1xf32> to vector<8x8xf32>
    %146 = arith.subf %142, %145 : vector<8x8xf32>
    %147 = math.exp %146 : vector<8x8xf32>
    %cst_60 = arith.constant dense<0.000000e+00> : vector<8xf32>
    %148 = vector.multi_reduction <add>, %147, %cst_60 [1] : vector<8x8xf32> to vector<8xf32>
    %149 = vector.shape_cast %148 : vector<8xf32> to vector<8x1xf32>
    %150 = tpu.reciprocal %149 {approx = true} : vector<8x1xf32> -> vector<8x1xf32>
    %151 = arith.mulf %149, %150 : vector<8x1xf32>
    %cst_61 = arith.constant 2.000000e+00 : f32
    %152 = vector.broadcast %cst_61 : f32 to vector<8x1xf32>
    %153 = arith.subf %152, %151 : vector<8x1xf32>
    %154 = arith.mulf %150, %153 : vector<8x1xf32>
    %155 = vector.broadcast %154 : vector<8x1xf32> to vector<8x8xf32>
    %156 = arith.mulf %147, %155 : vector<8x8xf32>
    %c3 = arith.constant 3 : index
    %c0_62 = arith.constant 0 : index
    %c0_63 = arith.constant 0 : index
    %157 = vector.load %arg5[%c3, %c0_62, %c0_63] : memref<4x8x8xf32, #tpu.memory_space<vmem>>, vector<1x8x8xf32>
    %158 = vector.shape_cast %157 : vector<1x8x8xf32> to vector<8x8xf32>
    %159 = vector.shape_cast %156 : vector<8x8xf32> to vector<1x8x8xf32>
    tpu.vector_store %arg5[%c3, %c0_62, %c0_63], %159 {strides = array<i32>} : memref<4x8x8xf32, #tpu.memory_space<vmem>>, vector<1x8x8xf32>,
    %cst_64 = arith.constant dense<0.000000e+00> : vector<8x16xf32>
    %160 = tpu.matmul %156, %139, %cst_64 {dimension_numbers = #tpu.dot_dimension_numbers<[1], [0], [0], [1], [0, 0, 1, 1], [], []>} : vector<8x8xf32>, vector<8x16xf32>, vector<8x16xf32> -> vector<8x16xf32>
    %c112_65 = arith.constant 112 : index
    %c0_66 = arith.constant 0 : index
    %161 = vector.load %arg3[%c112_65, %c0_66] : memref<131x32xf32, #tpu.memory_space<vmem>>, vector<16x32xf32>
    %cst_67 = arith.constant dense<0.000000e+00> : vector<8x32xf32>
    %162 = tpu.matmul %160, %161, %cst_67 {dimension_numbers = #tpu.dot_dimension_numbers<[1], [0], [0], [1], [0, 0, 1, 1], [], []>} : vector<8x16xf32>, vector<16x32xf32>, vector<8x32xf32> -> vector<8x32xf32>
    %163 = arith.addf %136, %162 : vector<8x32xf32>
    %cst_68 = arith.constant dense<0.000000e+00> : vector<8xf32>
    %164 = vector.multi_reduction <add>, %163, %cst_68 [1] : vector<8x32xf32> to vector<8xf32>
    %165 = vector.shape_cast %164 : vector<8xf32> to vector<8x1xf32>
    %cst_69 = arith.constant 3.200000e+01 : f32
    %166 = vector.broadcast %cst_69 : f32 to vector<8x1xf32>
    %167 = arith.divf %165, %166 : vector<8x1xf32>
    %168 = vector.broadcast %167 : vector<8x1xf32> to vector<8x32xf32>
    %169 = arith.subf %163, %168 : vector<8x32xf32>
    %170 = vector.broadcast %167 : vector<8x1xf32> to vector<8x32xf32>
    %171 = arith.subf %163, %170 : vector<8x32xf32>
    %172 = arith.mulf %169, %171 : vector<8x32xf32>
    %cst_70 = arith.constant dense<0.000000e+00> : vector<8xf32>
    %173 = vector.multi_reduction <add>, %172, %cst_70 [1] : vector<8x32xf32> to vector<8xf32>
    %174 = vector.shape_cast %173 : vector<8xf32> to vector<8x1xf32>
    %cst_71 = arith.constant 3.200000e+01 : f32
    %175 = vector.broadcast %cst_71 : f32 to vector<8x1xf32>
    %176 = arith.divf %174, %175 : vector<8x1xf32>
    %177 = vector.broadcast %167 : vector<8x1xf32> to vector<8x32xf32>
    %178 = arith.subf %163, %177 : vector<8x32xf32>
    %cst_72 = arith.constant 9.99999974E-6 : f32
    %179 = vector.broadcast %cst_72 : f32 to vector<8x1xf32>
    %180 = arith.addf %176, %179 : vector<8x1xf32>
    %181 = math.rsqrt %180 : vector<8x1xf32>
    %182 = vector.broadcast %181 : vector<8x1xf32> to vector<8x32xf32>
    %183 = arith.mulf %178, %182 : vector<8x32xf32>
    %184 = vector.broadcast %4 : vector<1x32xf32> to vector<8x32xf32>
    %185 = arith.mulf %183, %184 : vector<8x32xf32>
    %186 = vector.broadcast %5 : vector<1x32xf32> to vector<8x32xf32>
    %187 = arith.addf %185, %186 : vector<8x32xf32>
    %c8 = arith.constant 8 : index
    %c0_73 = arith.constant 0 : index
    %188 = vector.load %arg4[%c8, %c0_73] : memref<16x32xf32, #tpu.memory_space<vmem>>, vector<8x32xf32>
    tpu.vector_store %arg4[%c8, %c0_73], %187 {strides = array<i32>} : memref<16x32xf32, #tpu.memory_space<vmem>>, vector<8x32xf32>,
    return
  }
}

</mosaic_0001>

<bundles_post_ra>
// kernel: self_attn_forward.1
= control target key start
LH: loop header
LB: loop body
LE: loop exit
PB: predicated region body
PF: predicated region fallthrough
CT: control target
= control target key end

     0   :  { %11 = vsyncpa [#allocation3], 0  ;;  %vm46_vm0 = vcmask 261120   ;;  %s1936_s22 = smov 20   ;;  %s2221_s0 = inlined_call_operand.vmem [shape: f32[16,20], index: 0, kind: input, shape index: {}]   ;;  %s2222_s1 = inlined_call_operand.vmem [shape: f32[16,12], index: 1, kind: input, shape index: {}]   ;;  %s2223_s2 = inlined_call_operand.vmem [shape: f32[2,8], index: 2, kind: input, shape index: {}]   ;;  %s2224_s3 = inlined_call_operand.vmem [shape: f32[131,32], index: 3, kind: input, shape index: {}]   ;;  %s2225_s4 = inlined_call_operand.hbm [shape: f32[16,32], index: 4, kind: output, shape index: {0}]   ;;  %s2226_s5 = inlined_call_operand.hbm [shape: f32[4,8,8], index: 5, kind: output, shape index: {1}]  }
   0x1   :  { %v23_v0 = vld [vmem:[%s2222_s1] sm:$0xff]  ;;  %v41_v2 = vld [vmem:[%s2224_s3 + $0x8] sm:$0xff]  ;;  %vm1985_vm1 = vmpackc.low %vm46_vm0, %vm46_vm0 }
   0x2   :  { %v40_v1 = vld [vmem:[%s2224_s3] sm:$0xff]  ;;  %27 = vrot.lane.b32.xlu0 %v23_v0, %s1936_s22  ;;  %v24_v5 = vld [vmem:[%s2222_s1 + $0x8] sm:$0xff]  ;;  %v298_v11 = vld [vmem:[%s2224_s3 + $0x10] sm:$0xff] }
   0x3   :  { %v42_v4 = vld [vmem:[%s2224_s3 + $0x20] sm:$0xff]  ;;  %v1806_v6 = vpack.c.bf16 %v41_v2, %v40_v1  ;;  %v43_v7 = vld [vmem:[%s2224_s3 + $0x28] sm:$0xff]  ;;  %v299_v13 = vld [vmem:[%s2224_s3 + $0x18] sm:$0xff] }
   0x4   :  { %v1812_v8 = vpack.c.bf16 %v43_v7, %v42_v4  ;;  %v44_v9 = vld [vmem:[%s2224_s3 + $0x40] sm:$0xff]  ;;  %v45_v10 = vld [vmem:[%s2224_s3 + $0x48] sm:$0xff]  ;;  %v1824_v14 = vpack.c.bf16 %v299_v13, %v298_v11 }
   0x5   :  { %1808 = vmatprep.subr.msk.bf16.mxu0 %vm1985_vm1, %v1806_v6  ;;  %v1818_v12 = vpack.c.bf16 %v45_v10, %v44_v9 }
   0x6   :  { %29 = vrot.lane.b32.xlu0 %v24_v5, %s1936_s22  ;;  %1814 = vmatprep.subr.msk.bf16.mxu1 %vm1985_vm1, %v1812_v8 }
   0x7   :  { %1811 = vmatpush3.bf16.xpose.msk.msra.mxu0 %vm1985_vm1, %v1806_v6  ;;  %1817 = vmatpush3.bf16.xpose.msk.msra.mxu1 %vm1985_vm1, %v1812_v8 }
   0x8   :  { %12 = vsyncpa [#allocation5], 0  ;;  %1820 = vmatprep.subr.msk.bf16.mxu0 %vm1985_vm1, %v1818_v12  ;;  %1826 = vmatprep.subr.msk.bf16.mxu1 %vm1985_vm1, %v1824_v14  ;;  %vm33_vm2 = vcmask 162816   ;;  %v21_v15 = vld [vmem:[%s2221_s0] sm:$0xff]  ;;  %v22_v18 = vld [vmem:[%s2221_s0 + $0x8] sm:$0xff]  ;;  %v1937_v29 = vmov 0.0   ;;  %v554_v43 = vlaneseq }
   0x9   :  { %v300_v19 = vld [vmem:[%s2224_s3 + $0x30] sm:$0xff]  ;;  %v301_v20 = vld [vmem:[%s2224_s3 + $0x38] sm:$0xff]  ;;  %v2049_v27 = vld [vmem:[%s2224_s3 + $0x80] ss:$0 sm:$0xff]  ;;  %vm1938_vm3 = vmmov 0   ;;  %vm558_vm4 = vcmask 130048  }
   0xa   :  { %v302_v21 = vld [vmem:[%s2224_s3 + $0x50] sm:$0xff]  ;;  %v303_v22 = vld [vmem:[%s2224_s3 + $0x58] sm:$0xff]  ;;  %v1830_v25 = vpack.c.bf16 %v301_v20, %v300_v19  ;;  %v555_v44 = vshrl.u32 %v554_v43, 7  ;;  %v39_v46 = vld [vmem:[%s2223_s2] sm:$0x3]  ;;  %vm635_vm5 = vcmask 64512  }
   0xb   :  { %v1836_v26 = vpack.c.bf16 %v303_v22, %v302_v21  ;;  %v724_v57 = vld [vmem:[%s2224_s3 + $0x60] sm:$0xff]  ;;  %v725_v58 = vld [vmem:[%s2224_s3 + $0x68] sm:$0xff]  ;;  %v1939_v59 = vmov 0.0|0.0   ;;  %s1940_s13 = smov [#allocation4]  }
   0xc   :  { %v556_v45 = vsub.s32 0, %v555_v44  ;;  %v2112_v60 = vpack.c.bf16 %v725_v58, %v724_v57  ;;  %v1069_v7 = vsub.s32 1, %v555_v44  ;;  %s1586_s14 = sshll.u32 %s1940_s13, 4  ;;  %s1587_s14 = int_to_ptr.vmem [resolvable:$true] %s1586_s14 }
   0xd   :  { %s1888_s15 = scalar_lea.vmem %s1587_s14, 512  ;;  %p1893_p1 = scmp.lt.s32.totalorder %s1587_s14, %s1587_s14 }
   0xe   :  { %v2100_v47 = vrot.slane %v39_v46, %v556_v45  ;;  %v1070_v10 = vrot.slane %v39_v46, %v1069_v7  ;;  %p1889_p0 = scmp.ne.s32.totalorder %s1587_s14, %s1888_s15  ;;  %p1894_p2 = scmp.lt.s32.totalorder %s1888_s15, %s1888_s15 }
  0x10   :  { %p1895_p3 = por %p1894_p2, %p1893_p1 }
  0x12   :  { %p1896_p4 = pnand %p1895_p3, %p1889_p0 }
  0x74   :  { %v28_v16 = vpop.permute.xlu0 %27 }
  0x75   :  { %v2025_v17 = vsel %vm33_vm2, %v21_v15, %v28_v16 }
  0x76   :  { %1700 = vmatprep.mubr.msk.f32.mxu0 %vm46_vm0, %v2025_v17  ;;  %1707 = vmatprep.mubr.msk.f32.mxu1 %vm46_vm0, %v2025_v17 }
  0x78   :  { %v30_v23 = vpop.permute.xlu0 %29 }
  0x79   :  { %v35_v24 = vsel %vm33_vm2, %v22_v18, %v30_v23 }
  0x7a   :  { %1701 = vmatmul.mubr.msk.f32.vlgmr.msra.gmra.mrb[0].mxu0 %vm46_vm0, %v35_v24  ;;  %1708 = vmatmul.mubr.msk.f32.vlgmr.msra.gmra.mrb[0].mxu1 %vm46_vm0, %v35_v24  ;;  %v2054_v28 = vadd.f32 %v2049_v27, %v35_v24 }
  0x7b   :  { %1823 = vmatpush3.bf16.xpose.msk.msra.mxu0 %vm1985_vm1, %v1818_v12  ;;  %1829 = vmatpush3.bf16.xpose.msk.msra.mxu1 %vm1985_vm1, %v1824_v14 }
  0x7c   :  { %1714 = vmatprep.mubr.msk.f32.mxu0 %vm46_vm0, %v2025_v17  ;;  %1721 = vmatprep.mubr.msk.f32.mxu1 %vm46_vm0, %v2025_v17 }
  0x7d   :  { %1832 = vmatprep.subr.msk.bf16.mxu0 %vm1985_vm1, %v1830_v25  ;;  %1838 = vmatprep.subr.msk.bf16.mxu1 %vm1985_vm1, %v1836_v26 }
  0x82   :  { %1715 = vmatmul.mubr.msk.f32.vlgmr.msra.gmra.mrb[2].mxu0 %vm46_vm0, %v35_v24  ;;  %1722 = vmatmul.mubr.msk.f32.vlgmr.msra.gmra.mrb[2].mxu1 %vm46_vm0, %v35_v24 }
  0x83   :  { %1835 = vmatpush3.bf16.xpose.msk.msra.mxu0 %vm1985_vm1, %v1830_v25  ;;  %1728 = vmatprep.mubr.msk.f32.mxu0 %vm46_vm0, %v2025_v17 }
  0x84   :  { %1841 = vmatpush3.bf16.xpose.msk.msra.mxu1 %vm1985_vm1, %v1836_v26  ;;  %1735 = vmatprep.mubr.msk.f32.mxu1 %vm46_vm0, %v2025_v17 }
  0x85   :  { %1738 = vmatprep.subr.mxu1 %v1937_v29  ;;  %1842 = vmatprep.subr.bf16.mxu0 %v1939_v59 }
  0x8a   :  { %1729 = vmatmul.mubr.msk.f32.vlgmr.msra.gmra.mrb[4].mxu0 %vm46_vm0, %v35_v24 }
  0x8b   :  { %1736 = vmatmul.mubr.msk.f32.vlgmr.msra.gmra.mrb[4].mxu1 %vm46_vm0, %v35_v24  ;;  %1752 = vmatprep.mubr.msk.f32.mxu0 %vm1938_vm3, %v1937_v29 }
  0x8c   :  { %1740 = vmatprep.mubr.msk.f32.mxu1 %vm1938_vm3, %v1937_v29  ;;  %1844 = vmatpush3.bf16.msra.mxu0 %v2112_v60 }
  0x8d   :  { %1760 = vmatprep.subr.mxu0 %v1937_v29 }
 0x14d   :  { %v1702_v30 = vpop.f32.mrb[0].mxu0  ;;  %v1709_v31 = vpop.f32.mrb[0].mxu1 }
 0x14e   :  { %v125_v32 = vpop.f32.mrb[1].mxu0  ;;  %v208_v33 = vpop.f32.mrb[1].mxu1  ;;  %v135_v4 = vmul.f32 0.25, %v1702_v30 }
 0x14f   :  { %v134_v34 = vmul.f32 0.25, %v125_v32  ;;  %1739 = vmatpush3.xpose.msk.msra.mxu1 %vm558_vm4, %v208_v33 }
 0x150   :  { %1743 = vmatprep.subr.mxu1 %v1937_v29 }
 0x152   :  { %1741 = vmatmul.mubr.msk.f32.vlgmr.msra.gmra.mrb[6].mxu1 %vm558_vm4, %v134_v34 }
 0x153   :  { %1745 = vmatprep.mubr.msk.f32.mxu1 %vm1938_vm3, %v1937_v29 }
 0x155   :  { %v1716_v35 = vpop.f32.mrb[2].mxu0  ;;  %v2090_v36 = vpop.f32.mrb[2].mxu1 }
 0x156   :  { %v289_v37 = vpop.f32.mrb[3].mxu0  ;;  %v376_v38 = vpop.f32.mrb[3].mxu1 }
 0x157   :  { %1744 = vmatpush3.msra.mxu1 %v289_v37  ;;  %v385_v3 = vmul.f32 0.25, %v376_v38  ;;  %v386_v38 = vmul.f32 0.25, %v2090_v36 }
 0x158   :  { %1755 = vmatprep.subr.mxu1 %v1937_v29 }
 0x15d   :  { %v2093_v39 = vpop.f32.mrb[4].mxu0 }
 0x15e   :  { %v2095_v40 = vpop.f32.mrb[4].mxu1  ;;  %v459_v41 = vpop.f32.mrb[5].mxu0 }
 0x15f   :  { %v540_v42 = vpop.f32.mrb[5].mxu1 }
 0x225   :  { %v631_v48 = vpop.f32.mrb[6].mxu1 }
 0x226   :  { %v632_v49 = vadd.f32 %v631_v48, %v2100_v47  ;;  %v1742_v50 = vpop.f32.mrb[7].mxu1 }
 0x228   :  { %v636_v51 = vsel %vm635_vm5, %v632_v49, -inf }
 0x229   :  { %637 = vmax.xlane.f32.xlu1 %v636_v51  ;;  %v965_v51 = vld [vmem:[%s2224_s3 + $0x70] sm:$0xff] }
 0x2b6   :  { %v638_v52 = vpop.xlane.xlu1 %637 }
 0x2b7   :  { %v639_v53 = vsub.f32 %v632_v49, %v638_v52  ;;  %v966_v52 = vld [vmem:[%s2224_s3 + $0x78] sm:$0xff] }
 0x2b9   :  { %v640_v54 = vmul.f32 1.442695, %v639_v53  ;;  %v1846_v53 = vpack.c.bf16 %v966_v52, %v965_v51 }
 0x2bb   :  { %1868 = vpow2.f32 %v640_v54 }
 0x2c5   :  { %v1869_v55 = vpop.eup %1868 }
 0x2c6   :  { %v642_v56 = vsel %vm635_vm5, %v1869_v55, 0.0 }
 0x2c7   :  { %643 = vadd.xlane.f32.xlu1 %v642_v56 }
 0x354   :  { %v644_v61 = vpop.xlane.xlu1 %643 }
 0x355   :  { %1870 = vrcp.f32 %v644_v61 }
 0x35f   :  { %v1871_v62 = vpop.eup %1870 }
 0x360   :  { %v646_v63 = vmul.f32 %v1871_v62, %v644_v61 }
 0x362   :  { %v647_v0 = vsub.f32 2.0, %v646_v63 }
 0x364   :  { %v648_v1 = vmul.f32 %v1871_v62, %v647_v0 }
 0x366   :  { %v649_v2 = vmul.f32 %v1869_v55, %v648_v1 }
 0x368   :  { %650 = vst.msk [vmem:[#allocation4] sm:$0xff] %vm635_vm5, %v649_v2  ;;  %1746 = vmatmul.mubr.msk.f32.vlgmr.msra.gmra.mrb[8].mxu1 %vm635_vm5, %v649_v2 }
 0x369   :  { %1756 = vmatpush3.xpose.msk.msra.mxu1 %vm558_vm4, %v459_v41  ;;  %1757 = vmatprep.mubr.msk.f32.mxu1 %vm1938_vm3, %v1937_v29 }
 0x36a   :  { %1772 = vmatprep.subr.mxu1 %v1937_v29 }
 0x36c   :  { %1758 = vmatmul.mubr.msk.f32.vlgmr.msra.gmra.mrb[10].mxu1 %vm558_vm4, %v385_v3 }
 0x36d   :  { %1773 = vmatpush3.xpose.msk.msra.mxu1 %vm558_vm4, %v1709_v31  ;;  %1774 = vmatprep.mubr.msk.f32.mxu1 %vm1938_vm3, %v1937_v29 }
 0x36e   :  { %1777 = vmatprep.subr.mxu1 %v1937_v29 }
 0x370   :  { %1775 = vmatmul.mubr.msk.f32.vlgmr.msra.gmra.mrb[12].mxu1 %vm558_vm4, %v135_v4 }
 0x371   :  { %1778 = vmatpush3.msra.mxu1 %v1716_v35  ;;  %1779 = vmatprep.mubr.msk.f32.mxu1 %vm1938_vm3, %v1937_v29 }
 0x372   :  { %1789 = vmatprep.subr.mxu1 %v1937_v29 }
 0x43b   :  { %v720_v5 = vpop.f32.mrb[8].mxu1 }
 0x43c   :  { %v1747_v6 = vpop.f32.mrb[9].mxu1  ;;  %1753 = vmatmul.mubr.msk.f32.vlgmr.msra.gmra.mrb[6].mxu0 %vm558_vm4, %v720_v5 }
 0x43d   :  { %1761 = vmatpush3.msra.mxu0 %v540_v42  ;;  %1762 = vmatprep.mubr.msk.f32.mxu0 %vm1938_vm3, %v1937_v29 }
 0x43e   :  { %1845 = vmatprep.subr.bf16.mxu0 %v1939_v59 }
 0x43f   :  { %v872_v8 = vpop.f32.mrb[10].mxu1 }
 0x440   :  { %v1759_v9 = vpop.f32.mrb[11].mxu1  ;;  %v873_v20 = vadd.f32 %v872_v8, %v2100_v47 }
 0x442   :  { %v876_v22 = vsel %vm635_vm5, %v873_v20, -inf }
 0x443   :  { %v1143_v11 = vpop.f32.mrb[12].mxu1 }
 0x444   :  { %v1144_v12 = vadd.f32 %v1143_v11, %v1070_v10  ;;  %v1776_v13 = vpop.f32.mrb[13].mxu1 }
 0x446   :  { %v1147_v14 = vsel %vm635_vm5, %v1144_v12, -inf }
 0x447   :  { %1148 = vmax.xlane.f32.xlu0 %v1147_v14 }
 0x4d4   :  { %v1149_v15 = vpop.xlane.xlu0 %1148 }
 0x4d5   :  { %v1150_v16 = vsub.f32 %v1144_v12, %v1149_v15 }
 0x4d7   :  { %v1151_v18 = vmul.f32 1.442695, %v1150_v16 }
 0x4d9   :  { %1872 = vpow2.f32 %v1151_v18 }
 0x4e3   :  { %v1873_v19 = vpop.eup %1872 }
 0x4e4   :  { %v1153_v21 = vsel %vm635_vm5, %v1873_v19, 0.0 }
 0x4e5   :  { %1154 = vadd.xlane.f32.xlu1 %v1153_v21 }
 0x4e9   :  { %877 = vmax.xlane.f32.xlu1 %v876_v22 }
 0x572   :  { %v1155_v23 = vpop.xlane.xlu1 %1154 }
 0x573   :  { %1874 = vrcp.f32 %v1155_v23 }
 0x576   :  { %v878_v24 = vpop.xlane.xlu1 %877 }
 0x577   :  { %v879_v25 = vsub.f32 %v873_v20, %v878_v24  ;;  %v1634_v24 = vld [vmem:[%s2224_s3 + $0x81] ss:$0 sm:$0xff] }
 0x579   :  { %v880_v26 = vmul.f32 1.442695, %v879_v25 }
 0x57b   :  { %1876 = vpow2.f32 %v880_v26  ;;  %v1635_v26 = vld [vmem:[%s2224_s3 + $0x82] ss:$0 sm:$0xff] }
 0x57d   :  { %v1875_v30 = vpop.eup %1874 }
 0x57e   :  { %v1157_v31 = vmul.f32 %v1875_v30, %v1155_v23 }
 0x580   :  { %v1158_v32 = vsub.f32 2.0, %v1157_v31 }
 0x582   :  { %v1159_v33 = vmul.f32 %v1875_v30, %v1158_v32 }
 0x584   :  { %v1160_v34 = vmul.f32 %v1873_v19, %v1159_v33 }
 0x585   :  { %v1877_v35 = vpop.eup %1876 }
 0x586   :  { %1162 = vst.msk [vmem:[#allocation4 + $0x8] sm:$0xff] %vm635_vm5, %v1160_v34  ;;  %1780 = vmatmul.mubr.msk.f32.vlgmr.msra.gmra.mrb[14].mxu1 %vm635_vm5, %v1160_v34  ;;  %v882_v37 = vsel %vm635_vm5, %v1877_v35, 0.0 }
 0x587   :  { %1790 = vmatpush3.xpose.msk.msra.mxu1 %vm558_vm4, %v2093_v39  ;;  %883 = vadd.xlane.f32.xlu1 %v882_v37 }
 0x588   :  { %1791 = vmatprep.mubr.msk.f32.mxu1 %vm1938_vm3, %v1937_v29 }
 0x58a   :  { %1792 = vmatmul.mubr.msk.f32.vlgmr.msra.gmra.mrb[16].mxu1 %vm558_vm4, %v386_v38 }
 0x614   :  { %v884_v41 = vpop.xlane.xlu1 %883 }
 0x615   :  { %1878 = vrcp.f32 %v884_v41 }
 0x61f   :  { %v1879_v42 = vpop.eup %1878 }
 0x620   :  { %v886_v43 = vmul.f32 %v1879_v42, %v884_v41 }
 0x622   :  { %v887_v44 = vsub.f32 2.0, %v886_v43 }
 0x624   :  { %v888_v45 = vmul.f32 %v1879_v42, %v887_v44 }
 0x626   :  { %v889_v46 = vmul.f32 %v1877_v35, %v888_v45 }
 0x628   :  { %891 = vst.msk [vmem:[#allocation4 + $0x10] sm:$0xff] %vm635_vm5, %v889_v46  ;;  %1763 = vmatmul.mubr.msk.f32.vlgmr.msra.gmra.mrb[8].mxu0 %vm635_vm5, %v889_v46 }
 0x629   :  { %1769 = vmatprep.mubr.msk.f32.mxu0 %vm1938_vm3, %v1937_v29  ;;  %1847 = vmatpush3.bf16.msra.mxu0 %v1846_v53 }
 0x62a   :  { %1848 = vmatprep.subr.bf16.mxu0 %v1939_v59 }
 0x659   :  { %v1232_v36 = vpop.f32.mrb[14].mxu1 }
 0x65a   :  { %v1781_v39 = vpop.f32.mrb[15].mxu1 }
 0x65d   :  { %v1384_v47 = vpop.f32.mrb[16].mxu1 }
 0x65e   :  { %v1385_v48 = vadd.f32 %v1384_v47, %v1070_v10  ;;  %v1793_v49 = vpop.f32.mrb[17].mxu1 }
 0x660   :  { %v1388_v50 = vsel %vm635_vm5, %v1385_v48, -inf }
 0x661   :  { %1389 = vmax.xlane.f32.xlu1 %v1388_v50 }
 0x6ee   :  { %v1390_v54 = vpop.xlane.xlu1 %1389 }
 0x6ef   :  { %v1391_v55 = vsub.f32 %v1385_v48, %v1390_v54 }
 0x6f1   :  { %v1392_v56 = vmul.f32 1.442695, %v1391_v55 }
 0x6f3   :  { %1880 = vpow2.f32 %v1392_v56 }
 0x6fb   :  { %v961_v57 = vpop.f32.mrb[8].mxu0 }
 0x6fc   :  { %v1764_v58 = vpop.f32.mrb[9].mxu0  ;;  %1770 = vmatmul.mubr.msk.f32.vlgmr.msra.gmra.mrb[6].mxu0 %vm558_vm4, %v961_v57 }
 0x6fd   :  { %v1881_v61 = vpop.eup %1880  ;;  %1850 = vmatpush3.bf16.msra.mxu0 %v2112_v60  ;;  %1786 = vmatprep.mubr.msk.f32.mxu0 %vm1938_vm3, %v1937_v29 }
 0x6fe   :  { %1794 = vmatprep.subr.mxu0 %v1937_v29  ;;  %v1394_v62 = vsel %vm635_vm5, %v1881_v61, 0.0 }
 0x6ff   :  { %1395 = vadd.xlane.f32.xlu1 %v1394_v62 }
 0x700   :  { %1787 = vmatmul.mubr.msk.f32.vlgmr.msra.gmra.mrb[10].mxu0 %vm558_vm4, %v1232_v36 }
 0x701   :  { %1795 = vmatpush3.msra.mxu0 %v2095_v40  ;;  %1796 = vmatprep.mubr.msk.f32.mxu0 %vm1938_vm3, %v1937_v29  ;;  %v553_v40 = vadd.f32 %v2049_v27, %v2025_v17 }
 0x702   :  { %1851 = vmatprep.subr.bf16.mxu0 %v1939_v59 }
 0x78c   :  { %v1396_v63 = vpop.xlane.xlu1 %1395 }
 0x78d   :  { %1882 = vrcp.f32 %v1396_v63 }
 0x797   :  { %v1883_v60 = vpop.eup %1882 }
 0x798   :  { %v1398_v0 = vmul.f32 %v1883_v60, %v1396_v63 }
 0x79a   :  { %v1399_v1 = vsub.f32 2.0, %v1398_v0 }
 0x79c   :  { %v1400_v2 = vmul.f32 %v1883_v60, %v1399_v1 }
 0x79e   :  { %v1401_v3 = vmul.f32 %v1881_v61, %v1400_v2 }
 0x7a0   :  { %1403 = vst.msk [vmem:[#allocation4 + $0x18] sm:$0xff] %vm635_vm5, %v1401_v3  ;;  %1797 = vmatmul.mubr.msk.f32.vlgmr.msra.gmra.mrb[12].mxu0 %vm635_vm5, %v1401_v3 }
 0x7a1   :  { %1853 = vmatpush3.bf16.msra.mxu0 %v1846_v53  ;;  %1803 = vmatprep.mubr.msk.f32.mxu0 %vm1938_vm3, %v1937_v29 }
 0x7cf   :  { %v1036_v4 = vpop.f32.mrb[6].mxu0 }
 0x7d0   :  { %v1854_v59 = vadd.f32 %v1036_v4, %v553_v40  ;;  %v1771_v5 = vpop.f32.mrb[7].mxu0 }
 0x7d2   :  { %v1041_v6 = vsel %vm46_vm0, %v1854_v59, 0.0 }
 0x7d3   :  { %1042 = vadd.xlane.f32.xlu1 %v1041_v6 }
 0x860   :  { %v1043_v9 = vpop.xlane.xlu1 %1042 }
 0x861   :  { %v1045_v10 = vmul.f32 0.03125, %v1043_v9 }
 0x863   :  { %v1046_v11 = vsub.f32 %v1854_v59, %v1045_v10 }
 0x865   :  { %v1047_v17 = vmul.f32 %v1046_v11, %v1046_v11 }
 0x867   :  { %v1048_v27 = vsel %vm46_vm0, %v1047_v17, 0.0 }
 0x873   :  { %v1473_v7 = vpop.f32.mrb[12].mxu0 }
 0x874   :  { %v1798_v8 = vpop.f32.mrb[13].mxu0  ;;  %1804 = vmatmul.mubr.msk.f32.vlgmr.msra.gmra.mrb[10].mxu0 %vm558_vm4, %v1473_v7 }
 0x947   :  { %v1548_v12 = vpop.f32.mrb[10].mxu0 }
 0x948   :  { %v1855_v13 = vadd.f32 %v1548_v12, %v2054_v28  ;;  %v1805_v29 = vpop.f32.mrb[11].mxu0 }
 0x94a   :  { %v1553_v14 = vsel %vm46_vm0, %v1855_v13, 0.0 }
 0x94b   :  { %1554 = vadd.xlane.f32.xlu1 %v1553_v14 }
 0x94f   :  { %1049 = vadd.xlane.f32.xlu1 %v1048_v27 }
 0x9d8   :  { %v1555_v15 = vpop.xlane.xlu1 %1554 }
 0x9d9   :  { %v1556_v16 = vmul.f32 0.03125, %v1555_v15 }
 0x9db   :  { %v1557_v18 = vsub.f32 %v1855_v13, %v1556_v16 }
 0x9dc   :  { %v1050_v19 = vpop.xlane.xlu1 %1049 }
 0x9dd   :  { %v1051_v20 = vmul.f32 0.03125, %v1050_v19  ;;  %v1558_v21 = vmul.f32 %v1557_v18, %v1557_v18 }
 0x9df   :  { %v1052_v22 = vadd.f32 1e-05, %v1051_v20  ;;  %v1559_v23 = vsel %vm46_vm0, %v1558_v21, 0.0 }
 0x9e0   :  { %1560 = vadd.xlane.f32.xlu0 %v1559_v23 }
 0x9e1   :  { %1884 = vrsqrt.f32 %v1052_v22 }
 0x9eb   :  { %v1885_v28 = vpop.eup %1884 }
 0x9ec   :  { %v1054_v25 = vmul.f32 %v1885_v28, %v1046_v11 }
 0x9ee   :  { %v1059_v30 = vmul.f32 %v1634_v24, %v1054_v25 }
 0x9f0   :  { %v1064_v31 = vadd.f32 %v1635_v26, %v1059_v30 }
 0x9f2   :  { %1065 = vst.msk [vmem:[#allocation2] sm:$0xff] %vm46_vm0, %v1064_v31 }
 0x9f3   :  { %1899 = shalt.err (!%p1896_p4)
}
 0x9f4   :  { %s1900_s18 = scalar_lea.hbm %s2226_s5, 512 }
 0x9f5   :  { %p1901_p5 = scmp.ne.s32.totalorder %s2226_s5, %s1900_s18  ;;  %p1904_p6 = scmp.lt.u32.totalorder %s1900_s18, %s2226_s5 }
 0x9f7   :  { %p1906_p7 = pnand %p1904_p6, %p1901_p5 }
 0x9f9   :  { %1909 = shalt.err (!%p1906_p7)
}
 0x9fa   :  { %s1941_s22 = smov 128   ;;  %s1942_s23 = smov 8  }
 0x9fb   :  { %1592 = dma.vmem_to_hbm [thread:$0]  %s1587_s14, 512, %s2226_s5, [#allocation5], %s1941_s22, %s1941_s22, %s1942_s23  }
 0x9fc   :  { %s1943_s25 = smov [#allocation2]  }
 0x9fd   :  { %s1574_s26 = sshll.u32 %s1943_s25, 4  ;;  %s1575_s26 = int_to_ptr.vmem [resolvable:$true] %s1574_s26 }
 0x9fe   :  { %s1910_s27 = scalar_lea.vmem %s1575_s26, 256  ;;  %p1915_p9 = scmp.lt.s32.totalorder %s1575_s26, %s1575_s26 }
 0x9ff   :  { %p1911_p8 = scmp.ne.s32.totalorder %s1575_s26, %s1910_s27  ;;  %p1916_p10 = scmp.lt.s32.totalorder %s1910_s27, %s1910_s27 }
 0xa01   :  { %p1917_p11 = por %p1916_p10, %p1915_p9 }
 0xa03   :  { %p1918_p12 = pnand %p1917_p11, %p1911_p8 }
 0xa6d   :  { %v1561_v32 = vpop.xlane.xlu0 %1560 }
 0xa6e   :  { %v1562_v33 = vmul.f32 0.03125, %v1561_v32 }
 0xa70   :  { %v1563_v34 = vadd.f32 1e-05, %v1562_v33 }
 0xa72   :  { %1886 = vrsqrt.f32 %v1563_v34 }
 0xa7c   :  { %v1887_v35 = vpop.eup %1886 }
 0xa7d   :  { %v1565_v37 = vmul.f32 %v1887_v35, %v1557_v18 }
 0xa7f   :  { %v1566_v38 = vmul.f32 %v1634_v24, %v1565_v37 }
 0xa81   :  { %v1567_v41 = vadd.f32 %v1635_v26, %v1566_v38 }
 0xa83   :  { %1568 = vst.msk [vmem:[#allocation2 + $0x8] sm:$0xff] %vm46_vm0, %v1567_v41 }
 0xa84   :  { %1921 = shalt.err (!%p1918_p12)
}
 0xa85   :  { %s1922_s2 = scalar_lea.hbm %s2225_s4, 256 }
 0xa86   :  { %p1923_p13 = scmp.ne.s32.totalorder %s2225_s4, %s1922_s2  ;;  %p1926_p0 = scmp.lt.u32.totalorder %s1922_s2, %s2225_s4 }
 0xa88   :  { %p1928_p1 = pnand %p1926_p0, %p1923_p13 }
 0xa8a   :  { %1931 = shalt.err (!%p1928_p1)
}
 0xa8b   :  { %1580 = dma.vmem_to_hbm [thread:$0]  %s1575_s26, 256, %s2225_s4, [#allocation3], %s1941_s22, %s1941_s22, %s1942_s23  }
 0xa8c   :  { %1932 = dma.done.wait [#allocation3], 256  }
 0xa8d   :  { %1933 = vsyncadd [#allocation3], 4294967040 }
 0xa8e   :  { %1934 = dma.done.wait [#allocation5], 512  }
 0xa8f   :  { %1935 = vsyncadd [#allocation5], 4294966784 }
 0xa90   :  { %1599 = vsyncpa [#allocation3], 1 }
 0xa91   :  { %1600 = vsyncpa [#allocation5], 1 }

</bundles_post_ra>
